<compile_context>
chip_gen: v5e
topology: v5e:2x2
jax: 0.10.0
libtpu: 0.0.40
codegen_flags: <defaults>
</compile_context>

<pallas_src>
import jax
import jax.numpy as jnp
from jax.experimental import pallas as pl
from jax.experimental.pallas import tpu as pltpu


def _edge_mlp_kernel(s_ref, d_ref, e_ref, u_ref, w1_ref, b1_ref, w2_ref, b2_ref,
                     o_ref):
    # s/d/e/u: [1, TILE_E]  (feature-major rows, E on lanes)
    # w1: [10, 4], b1: [10, 1], w2: [19, 10], b2: [19, 1]   (PyTorch [out, in])
    s = s_ref[...]
    d = d_ref[...]
    ea = e_ref[...]
    ug = u_ref[...]
    w1 = w1_ref[...]

    # Layer 1 fused as VPU broadcast-FMAs: [10,1] * [1,TILE_E] -> [10, TILE_E].
    h = (w1[:, 0:1] * s
         + w1[:, 1:2] * d
         + w1[:, 2:3] * ea
         + w1[:, 3:4] * ug
         + b1_ref[...])
    h = jnp.maximum(h, 0.0)                                   # ReLU

    # Layer 2 on the MXU, lane-dense output: [19,10] @ [10,TILE_E] -> [19,TILE_E].
    o = jnp.dot(w2_ref[...], h, preferred_element_type=jnp.float32) + b2_ref[...]
    o_ref[...] = o.astype(o_ref.dtype)


def edge_model_forward(src, dest, edge_attr, u, batch, params, *, tile_e=16384):
    """Pallas-backed EdgeModel.forward. Returns [E, 19] float32."""
    w1, b1, w2, b2 = params                                   # [10,4],[10],[19,10],[19]
    E = src.shape[0]

    # Tile size: multiple of 128, capped by (padded) E so tiny graphs stay tiny.
    tile_e = max(128, (min(tile_e, ((E + 127) // 128) * 128) // 128) * 128)
    e_pad = pl.cdiv(E, tile_e) * tile_e
    grid = (e_pad // tile_e,)

    def row(x):  # [E,1] -> feature-major, zero-padded [1, e_pad]
        r = x.reshape(1, E).astype(jnp.float32)
        return jnp.pad(r, ((0, 0), (0, e_pad - E)))

    s_row = row(src)
    d_row = row(dest)
    e_row = row(edge_attr)
    u_row = row(u[batch])            # per-edge globals gathered wrapper-side (tiny)

    row_spec = pl.BlockSpec((1, tile_e), lambda i: (0, i))
    const = lambda shape: pl.BlockSpec(shape, lambda i: (0, 0))   # pinned params

    out_fm = pl.pallas_call(
        _edge_mlp_kernel,
        out_shape=jax.ShapeDtypeStruct((19, e_pad), jnp.float32),
        grid=grid,
        in_specs=[row_spec, row_spec, row_spec, row_spec,
                  const((10, 4)), const((10, 1)),
                  const((19, 10)), const((19, 1))],
        out_specs=pl.BlockSpec((19, tile_e), lambda i: (0, i)),
        compiler_params=pltpu.CompilerParams(
            dimension_semantics=("parallel",),
            vmem_limit_bytes=32 * 1024 * 1024),
    )(s_row, d_row, e_row, u_row,
      w1, b1.reshape(10, 1), w2, b2.reshape(19, 1))

    # Back to the PyTorch [E, 19] convention; drop padded columns.
    return out_fm[:, :E].T


def init_params(key):
    """PyTorch Linear layout: weight is [out_features, in_features]."""
    k1, k2, k3, k4 = jax.random.split(key, 4)
    w1 = jax.random.normal(k1, (10, 4), jnp.float32) * 0.1
    b1 = jax.random.normal(k2, (10,), jnp.float32) * 0.1
    w2 = jax.random.normal(k3, (19, 10), jnp.float32) * 0.1
    b2 = jax.random.normal(k4, (19,), jnp.float32) * 0.1
    return (w1, b1, w2, b2)


def reference_forward(src, dest, edge_attr, u, batch, params):
    """Pure-JAX reference mirroring the PyTorch module."""
    w1, b1, w2, b2 = params
    x = jnp.concatenate([src, dest, edge_attr, u[batch]], axis=1)   # [E, 4]
    h = jnp.maximum(x @ w1.T + b1, 0.0)
    return h @ w2.T + b2


if __name__ == "__main__":
    key = jax.random.PRNGKey(0)
    kp, ks, kd, ke, ku = jax.random.split(key, 5)

    E = 8   # number of edges
    B = 2   # number of graphs

    params = init_params(kp)
    src = jax.random.normal(ks, (E, 1), jnp.float32)
    dest = jax.random.normal(kd, (E, 1), jnp.float32)
    edge_attr = jax.random.normal(ke, (E, 1), jnp.float32)
    u = jax.random.normal(ku, (B, 1), jnp.float32)
    batch = jnp.array([0, 0, 0, 0, 1, 1, 1, 1], dtype=jnp.int32)

    out = edge_model_forward(src, dest, edge_attr, u, batch, params)
    out = jax.block_until_ready(out)

    ref = reference_forward(src, dest, edge_attr, u, batch, params)
    assert out.shape == (E, 19), out.shape
    assert jnp.allclose(out, ref, atol=1e-5, rtol=1e-5), "mismatch vs reference"

    print("KERNEL_OK")
</pallas_src>

<mosaic_0001>
module attributes {stable_mosaic.version = 11 : i64} {
  func.func @_edge_mlp_kernel(%arg0: i32, %arg1: memref<1x128xf32, #tpu.memory_space<vmem>>, %arg2: memref<1x128xf32, #tpu.memory_space<vmem>>, %arg3: memref<1x128xf32, #tpu.memory_space<vmem>>, %arg4: memref<1x128xf32, #tpu.memory_space<vmem>>, %arg5: memref<10x4xf32, #tpu.memory_space<vmem>>, %arg6: memref<10x1xf32, #tpu.memory_space<vmem>>, %arg7: memref<19x10xf32, #tpu.memory_space<vmem>>, %arg8: memref<19x1xf32, #tpu.memory_space<vmem>>, %arg9: memref<19x128xf32, #tpu.memory_space<vmem>>) attributes {dimension_semantics = [#tpu.dimension_semantics<parallel>], iteration_bounds = array<i64: 1>, scalar_prefetch = 0 : i64, scratch_operands = 0 : i64, tpu.core_type = #tpu.core_type<tc>, window_params = [{transform_indices = @transform_0, window_bounds = array<i64: 1, 128>}, {transform_indices = @transform_1, window_bounds = array<i64: 1, 128>}, {transform_indices = @transform_2, window_bounds = array<i64: 1, 128>}, {transform_indices = @transform_3, window_bounds = array<i64: 1, 128>}, {pipeline_mode = #tpu.pipeline_mode<synchronous>, transform_indices = @transform_4, window_bounds = array<i64: 10, 4>}, {pipeline_mode = #tpu.pipeline_mode<synchronous>, transform_indices = @transform_5, window_bounds = array<i64: 10, 1>}, {pipeline_mode = #tpu.pipeline_mode<synchronous>, transform_indices = @transform_6, window_bounds = array<i64: 19, 10>}, {pipeline_mode = #tpu.pipeline_mode<synchronous>, transform_indices = @transform_7, window_bounds = array<i64: 19, 1>}, {transform_indices = @transform_8, window_bounds = array<i64: 19, 128>}]} {
    %c0 = arith.constant 0 : index
    %c0_0 = arith.constant 0 : index
    %0 = vector.load %arg1[%c0, %c0_0] : memref<1x128xf32, #tpu.memory_space<vmem>>, vector<1x128xf32>
    %c0_1 = arith.constant 0 : index
    %c0_2 = arith.constant 0 : index
    %1 = vector.load %arg2[%c0_1, %c0_2] : memref<1x128xf32, #tpu.memory_space<vmem>>, vector<1x128xf32>
    %c0_3 = arith.constant 0 : index
    %c0_4 = arith.constant 0 : index
    %2 = vector.load %arg3[%c0_3, %c0_4] : memref<1x128xf32, #tpu.memory_space<vmem>>, vector<1x128xf32>
    %c0_5 = arith.constant 0 : index
    %c0_6 = arith.constant 0 : index
    %3 = vector.load %arg4[%c0_5, %c0_6] : memref<1x128xf32, #tpu.memory_space<vmem>>, vector<1x128xf32>
    %c0_7 = arith.constant 0 : index
    %c0_8 = arith.constant 0 : index
    %4 = vector.load %arg5[%c0_7, %c0_8] : memref<10x4xf32, #tpu.memory_space<vmem>>, vector<10x4xf32>
    %5 = vector.extract_strided_slice %4 {offsets = [0, 0], sizes = [10, 1], strides = [1, 1]} : vector<10x4xf32> to vector<10x1xf32>
    %6 = vector.broadcast %5 : vector<10x1xf32> to vector<10x128xf32>
    %7 = vector.broadcast %0 : vector<1x128xf32> to vector<10x128xf32>
    %8 = arith.mulf %6, %7 : vector<10x128xf32>
    %9 = vector.extract_strided_slice %4 {offsets = [0, 1], sizes = [10, 1], strides = [1, 1]} : vector<10x4xf32> to vector<10x1xf32>
    %10 = vector.broadcast %9 : vector<10x1xf32> to vector<10x128xf32>
    %11 = vector.broadcast %1 : vector<1x128xf32> to vector<10x128xf32>
    %12 = arith.mulf %10, %11 : vector<10x128xf32>
    %13 = arith.addf %8, %12 : vector<10x128xf32>
    %14 = vector.extract_strided_slice %4 {offsets = [0, 2], sizes = [10, 1], strides = [1, 1]} : vector<10x4xf32> to vector<10x1xf32>
    %15 = vector.broadcast %14 : vector<10x1xf32> to vector<10x128xf32>
    %16 = vector.broadcast %2 : vector<1x128xf32> to vector<10x128xf32>
    %17 = arith.mulf %15, %16 : vector<10x128xf32>
    %18 = arith.addf %13, %17 : vector<10x128xf32>
    %19 = vector.extract_strided_slice %4 {offsets = [0, 3], sizes = [10, 1], strides = [1, 1]} : vector<10x4xf32> to vector<10x1xf32>
    %20 = vector.broadcast %19 : vector<10x1xf32> to vector<10x128xf32>
    %21 = vector.broadcast %3 : vector<1x128xf32> to vector<10x128xf32>
    %22 = arith.mulf %20, %21 : vector<10x128xf32>
    %23 = arith.addf %18, %22 : vector<10x128xf32>
    %c0_9 = arith.constant 0 : index
    %c0_10 = arith.constant 0 : index
    %24 = vector.load %arg6[%c0_9, %c0_10] : memref<10x1xf32, #tpu.memory_space<vmem>>, vector<10x1xf32>
    %25 = vector.broadcast %24 : vector<10x1xf32> to vector<10x128xf32>
    %26 = arith.addf %23, %25 : vector<10x128xf32>
    %cst = arith.constant 0.000000e+00 : f32
    %27 = vector.broadcast %cst : f32 to vector<10x128xf32>
    %28 = arith.maximumf %26, %27 : vector<10x128xf32>
    %c0_11 = arith.constant 0 : index
    %c0_12 = arith.constant 0 : index
    %29 = vector.load %arg7[%c0_11, %c0_12] : memref<19x10xf32, #tpu.memory_space<vmem>>, vector<19x10xf32>
    %cst_13 = arith.constant dense<0.000000e+00> : vector<19x128xf32>
    %30 = tpu.matmul %29, %28, %cst_13 {dimension_numbers = #tpu.dot_dimension_numbers<[1], [0], [0], [1], [0, 0, 1, 1], [], []>} : vector<19x10xf32>, vector<10x128xf32>, vector<19x128xf32> -> vector<19x128xf32>
    %c0_14 = arith.constant 0 : index
    %c0_15 = arith.constant 0 : index
    %31 = vector.load %arg8[%c0_14, %c0_15] : memref<19x1xf32, #tpu.memory_space<vmem>>, vector<19x1xf32>
    %32 = vector.broadcast %31 : vector<19x1xf32> to vector<19x128xf32>
    %33 = arith.addf %30, %32 : vector<19x128xf32>
    %c0_16 = arith.constant 0 : index
    %c0_17 = arith.constant 0 : index
    %34 = vector.load %arg9[%c0_16, %c0_17] : memref<19x128xf32, #tpu.memory_space<vmem>>, vector<19x128xf32>
    tpu.vector_store %arg9[%c0_16, %c0_17], %33 {strides = array<i32>} : memref<19x128xf32, #tpu.memory_space<vmem>>, vector<19x128xf32>,
    return
  }
  func.func @transform_0(%arg0: i32) -> (i32, i32) {
    %c0_i32 = arith.constant 0 : i32
    %c0_i32_0 = arith.constant 0 : i32
    return %c0_i32, %arg0 : i32, i32
  }
  func.func @transform_1(%arg0: i32) -> (i32, i32) {
    %c0_i32 = arith.constant 0 : i32
    %c0_i32_0 = arith.constant 0 : i32
    return %c0_i32, %arg0 : i32, i32
  }
  func.func @transform_2(%arg0: i32) -> (i32, i32) {
    %c0_i32 = arith.constant 0 : i32
    %c0_i32_0 = arith.constant 0 : i32
    return %c0_i32, %arg0 : i32, i32
  }
  func.func @transform_3(%arg0: i32) -> (i32, i32) {
    %c0_i32 = arith.constant 0 : i32
    %c0_i32_0 = arith.constant 0 : i32
    return %c0_i32, %arg0 : i32, i32
  }
  func.func @transform_4(%arg0: i32) -> (i32, i32) {
    %c0_i32 = arith.constant 0 : i32
    %c0_i32_0 = arith.constant 0 : i32
    %c0_i32_1 = arith.constant 0 : i32
    return %c0_i32, %c0_i32_0 : i32, i32
  }
  func.func @transform_5(%arg0: i32) -> (i32, i32) {
    %c0_i32 = arith.constant 0 : i32
    %c0_i32_0 = arith.constant 0 : i32
    %c0_i32_1 = arith.constant 0 : i32
    return %c0_i32, %c0_i32_0 : i32, i32
  }
  func.func @transform_6(%arg0: i32) -> (i32, i32) {
    %c0_i32 = arith.constant 0 : i32
    %c0_i32_0 = arith.constant 0 : i32
    %c0_i32_1 = arith.constant 0 : i32
    return %c0_i32, %c0_i32_0 : i32, i32
  }
  func.func @transform_7(%arg0: i32) -> (i32, i32) {
    %c0_i32 = arith.constant 0 : i32
    %c0_i32_0 = arith.constant 0 : i32
    %c0_i32_1 = arith.constant 0 : i32
    return %c0_i32, %c0_i32_0 : i32, i32
  }
  func.func @transform_8(%arg0: i32) -> (i32, i32) {
    %c0_i32 = arith.constant 0 : i32
    %c0_i32_0 = arith.constant 0 : i32
    return %c0_i32, %arg0 : i32, i32
  }
}

</mosaic_0001>

<bundles_post_ra>
// kernel: tpu_custom_call.1
= control target key start
LH: loop header
LB: loop body
LE: loop exit
PB: predicated region body
PF: predicated region fallthrough
CT: control target
= control target key end

     0   :  { %v248_v2 = vmov 1   ;;  %v249_v3 = vmov 0   ;;  %v250_v4 = vmov 2   ;;  %s345_s0 = inlined_call_operand.vmem [shape: f32[1,128], index: 0, kind: input, shape index: {}]   ;;  %s346_s1 = inlined_call_operand.vmem [shape: f32[1,128], index: 1, kind: input, shape index: {}]   ;;  %s347_s2 = inlined_call_operand.vmem [shape: f32[1,128], index: 2, kind: input, shape index: {}]   ;;  %s348_s3 = inlined_call_operand.vmem [shape: f32[1,128], index: 3, kind: input, shape index: {}]   ;;  %s349_s4 = inlined_call_operand.vmem [shape: f32[10,4], index: 4, kind: input, shape index: {}]   ;;  %s350_s5 = inlined_call_operand.vmem [shape: f32[10,1], index: 5, kind: input, shape index: {}]   ;;  %s351_s6 = inlined_call_operand.vmem [shape: f32[19,10], index: 6, kind: input, shape index: {}]   ;;  %s352_s7 = inlined_call_operand.vmem [shape: f32[19,1], index: 7, kind: input, shape index: {}]   ;;  %s353_s8 = inlined_call_operand.hbm [shape: f32[19,128], index: 8, kind: output, shape index: {}]  }
   0x1   :  { %v35_v0 = vld [vmem:[%s349_s4 + $0x8] sm:$0x3]  ;;  %v34_v1 = vld [vmem:[%s349_s4] sm:$0xff]  ;;  %209 = vset.pattern.permute.xlu0 %v248_v2  ;;  %211 = vset.pattern.permute.xlu1 %v249_v3 }
   0x2   :  { %56 = vperm.xlu0 %209, %v35_v0   ;;  %38 = vperm.xlu1 %211, %v34_v1  }
   0x3   :  { %213 = vset.pattern.permute.xlu2 %v250_v4 }
   0x4   :  { %13 = vsyncpa [#allocation3], 0  ;;  %71 = vperm.xlu2 %213, %v35_v0   ;;  %v97_v5 = vld [vmem:[%s350_s5 + $0x8] sm:$0x3]  ;;  %v251_v6 = vmov 3   ;;  %v96_v7 = vld [vmem:[%s350_s5] sm:$0xff] }
   0x5   :  { %v116_v8 = vld [vmem:[%s352_s7 + $0x8] sm:$0xff]  ;;  %v115_v12 = vld [vmem:[%s352_s7] sm:$0xff]  ;;  %v117_v18 = vld [vmem:[%s352_s7 + $0x10] sm:$0x7]  ;;  %vm143_vm0 = vcmask 1041408   ;;  %vm133_vm1 = vcmask 80896  }
   0x6   :  { %v220_v13 = vld [vmem:[%s346_s1] ss:$0 sm:$0xff]  ;;  %v113_v44 = vld [vmem:[%s351_s6 + $0x8] sm:$0xff]  ;;  %v114_v45 = vld [vmem:[%s351_s6 + $0x10] sm:$0x7]  ;;  %s252_s26 = smov [#allocation2]  }
   0x7   :  { %v219_v15 = vld [vmem:[%s345_s0] ss:$0 sm:$0xff]  ;;  %s180_s27 = sshll.u32 %s252_s26, 4  ;;  %s253_s30 = smov 128   ;;  %s181_s27 = int_to_ptr.vmem [resolvable:$true] %s180_s27 }
   0x8   :  { %v218_v21 = vld [vmem:[%s347_s2] ss:$0 sm:$0xff]  ;;  %s254_s9 = smov 8  }
   0x9   :  { %v221_v26 = vld [vmem:[%s348_s3] ss:$0 sm:$0xff] }
   0xa   :  { %210 = vset.pattern.permute.xlu0 %v249_v3  ;;  %212 = vset.pattern.permute.xlu1 %v248_v2  ;;  %v112_v43 = vld [vmem:[%s351_s6] sm:$0xff]  ;;  %s182_s6 = sshll.u32 %s353_s8, 4  ;;  %s183_s6 = int_to_ptr.hbm [resolvable:$true] %s182_s6 }
   0xb   :  { %43 = vperm.xlu0 %210, %v35_v0   ;;  %52 = vperm.xlu1 %212, %v34_v1  }
   0xc   :  { %67 = vperm.xlu2 %213, %v34_v1  }
  0x13   :  { %105 = vperm.xlu0 %210, %v97_v5   ;;  %214 = vset.pattern.permute.xlu1 %v251_v6 }
  0x14   :  { %86 = vperm.xlu1 %214, %v35_v0   ;;  %215 = vset.pattern.permute.xlu2 %v251_v6 }
  0x15   :  { %82 = vperm.xlu2 %215, %v34_v1  }
  0x1c   :  { %216 = vset.pattern.permute.xlu1 %v249_v3 }
  0x1d   :  { %100 = vperm.xlu1 %216, %v96_v7   ;;  %217 = vset.pattern.permute.xlu2 %v249_v3 }
  0x1e   :  { %120 = vperm.xlu2 %217, %v115_v12  }
  0x25   :  { %125 = vperm.xlu1 %216, %v116_v8  }
  0x26   :  { %130 = vperm.xlu2 %217, %v117_v18  }
  0x5e   :  { %v72_v9 = vpop.permute.xlu2 %71 }
  0x5f   :  { %v78_v25 = vmul.f32 %v218_v21, %v72_v9 }
  0x66   :  { %v68_v14 = vpop.permute.xlu2 %67 }
  0x67   :  { %v77_v32 = vmul.f32 %v218_v21, %v68_v14 }
  0x6f   :  { %v83_v29 = vpop.permute.xlu2 %82 }
  0x70   :  { %v92_v34 = vmul.f32 %v221_v26, %v83_v29 }
  0x74   :  { %v39_v10 = vpop.permute.xlu1 %38  ;;  %v57_v11 = vpop.permute.xlu0 %56 }
  0x75   :  { %v63_v19 = vmul.f32 %v220_v13, %v57_v11  ;;  %v49_v24 = vmul.f32 %v219_v15, %v39_v10 }
  0x78   :  { %v121_v46 = vpop.permute.xlu2 %120 }
  0x7d   :  { %v44_v16 = vpop.permute.xlu0 %43  ;;  %v53_v17 = vpop.permute.xlu1 %52 }
  0x7e   :  { %v50_v20 = vmul.f32 %v219_v15, %v44_v16  ;;  %v62_v22 = vmul.f32 %v220_v13, %v53_v17 }
  0x80   :  { %v65_v23 = vadd.f32 %v63_v19, %v50_v20  ;;  %v64_v27 = vadd.f32 %v62_v22, %v49_v24  ;;  %v131_v52 = vpop.permute.xlu2 %130 }
  0x82   :  { %v80_v30 = vadd.f32 %v78_v25, %v65_v23  ;;  %v79_v36 = vadd.f32 %v77_v32, %v64_v27 }
  0x84   :  { %v94_v39 = vadd.f32 %v92_v34, %v79_v36 }
  0x85   :  { %v106_v35 = vpop.permute.xlu0 %105 }
  0x86   :  { %v87_v28 = vpop.permute.xlu1 %86 }
  0x87   :  { %v93_v31 = vmul.f32 %v221_v26, %v87_v28 }
  0x89   :  { %v95_v33 = vadd.f32 %v93_v31, %v80_v30 }
  0x8b   :  { %v109_v37 = vadd.f32 %v106_v35, %v95_v33 }
  0x8d   :  { %v111_v38 = vmax.f32 %v109_v37, 0.0 }
  0x8f   :  { %v101_v40 = vpop.permute.xlu1 %100  ;;  %194 = vmatpush.msk.msra.mxu0 %vm143_vm0, %v111_v38  ;;  %198 = vmatpush.msk.msra.mxu1 %vm143_vm0, %v111_v38 }
  0x90   :  { %v108_v41 = vadd.f32 %v101_v40, %v94_v39  ;;  %199 = vmatpush.msk.msra.mxu2 %vm143_vm0, %v111_v38 }
  0x92   :  { %v110_v42 = vmax.f32 %v108_v41, 0.0 }
  0x94   :  { %162 = vmatpush.msra.mxu0 %v110_v42  ;;  %200 = vmatpush.msra.mxu1 %v110_v42 }
  0x95   :  { %201 = vmatpush.msra.mxu2 %v110_v42  ;;  %195 = vmatmul.msk.f32.vlgmr.msra.gmra.mxu0 %vm133_vm1, %v112_v43 }
  0x96   :  { %196 = vmatmul.msk.f32.vlgmr.msra.gmra.mxu1 %vm133_vm1, %v113_v44  ;;  %197 = vmatmul.msk.f32.vlgmr.msra.gmra.mxu2 %vm133_vm1, %v114_v45 }
  0x97   :  { %v126_v48 = vpop.permute.xlu1 %125 }
 0x112   :  { %v164_v47 = vpop.f32.mrf.mxu0 }
 0x113   :  { %v165_v49 = vadd.f32 %v164_v47, %v121_v46  ;;  %v167_v50 = vpop.f32.mrf.mxu1 }
 0x114   :  { %v168_v51 = vadd.f32 %v167_v50, %v126_v48 }
 0x115   :  { %173 = vst [vmem:[#allocation2] sm:$0xff] %v165_v49 }
 0x116   :  { %174 = vst [vmem:[#allocation2 + $0x8] sm:$0xff] %v168_v51 }
 0x119   :  { %v170_v53 = vpop.f32.mrf.mxu2 }
 0x11a   :  { %v171_v54 = vadd.f32 %v170_v53, %v131_v52 }
 0x11c   :  { %175 = vst [vmem:[#allocation2 + $0x10] sm:$0x7] %v171_v54 }
 0x11d   :  { %188 = dma.vmem_to_hbm [thread:$0]  %s181_s27, 384, %s183_s6, [#allocation3], %s253_s30, %s253_s30, %s254_s9  }
 0x11e   :  { %246 = dma.done.wait [#allocation3], 384  }
 0x11f   :  { %247 = vsyncadd [#allocation3], 4294966912 }
 0x120   :  { %193 = vsyncpa [#allocation3], 1 }

</bundles_post_ra>
